<compile_context>
chip_gen: v7x
topology: tpu7x:2x2x1
jax: 0.10.0
libtpu: 0.0.40
codegen_flags: <defaults>
</compile_context>

<pallas_src>
import jax
import jax.numpy as jnp
from jax.experimental import pallas as pl
from jax.experimental.pallas import tpu as pltpu

EPS_F32 = 1e-07      # self.eps[torch.float32]
MIN_NORM = 1e-15     # self.min_norm


def proj_kernel(k_ref, u_ref, p_ref, n_ref, uo_ref, po_ref, no_ref):
    """Hyperboloid.proj for one (TB, D) row tile of each of the 3 inputs."""
    K = k_ref[0]                                   # K = 1/c, precomputed on host
    TB, D = u_ref.shape
    # Build the first-column mask ONCE per grid step; reuse for all 3 inputs.
    col0 = jax.lax.broadcasted_iota(jnp.int32, (TB, D), 1) == 0

    def proj_one(x_ref, o_ref):
        x = x_ref[...]
        sq = x * x
        # zero out the time coordinate before the row reduction
        y_sqnorm = jnp.sum(jnp.where(col0, 0.0, sq), axis=-1, keepdims=True)
        first = jnp.sqrt(jnp.maximum(K + y_sqnorm, EPS_F32))     # (TB, 1)
        # Full-tile select -> single unmasked, lane-dense store.
        o_ref[...] = jnp.where(col0, first, x)

    proj_one(u_ref, uo_ref)
    proj_one(p_ref, po_ref)
    proj_one(n_ref, no_ref)


def model_forward(user_emb, pos_emb, neg_emb, c, *, tb=512):
    """Pallas equivalent of Model.forward: returns (user_hyp, pos_hyp, neg_hyp)."""
    B, D = user_emb.shape
    # Row tile: whole array if small, else `tb` rows (multiple of 8 for layout).
    if B <= tb:
        TB = B                      # block dim == full array dim -> always legal
    else:
        TB = tb
        assert TB % 8 == 0, "row tile must be a multiple of 8"
    grid = (pl.cdiv(B, TB),)

    k_arr = (jnp.float32(1.0) / jnp.asarray(c, dtype=jnp.float32)).reshape((1,))

    vmem_spec = pl.BlockSpec((TB, D), lambda i: (i, 0))
    smem_spec = pl.BlockSpec(memory_space=pltpu.MemorySpace.SMEM)
    out_shape = jax.ShapeDtypeStruct((B, D), jnp.float32)

    return pl.pallas_call(
        proj_kernel,
        grid=grid,
        in_specs=[smem_spec, vmem_spec, vmem_spec, vmem_spec],
        out_specs=(vmem_spec, vmem_spec, vmem_spec),
        out_shape=(out_shape, out_shape, out_shape),
        compiler_params=pltpu.CompilerParams(
            dimension_semantics=("parallel",),
        ),
    )(k_arr, user_emb, pos_emb, neg_emb)


# ----------------------- plain-JAX glue (matches __init__) -----------------------

def proj_ref(x, c):
    """Pure-JAX reference for Hyperboloid.proj (used for init + correctness check)."""
    K = 1.0 / c
    y_sqnorm = jnp.sum(x[:, 1:] ** 2, axis=1, keepdims=True)
    first = jnp.sqrt(jnp.maximum(K + y_sqnorm, EPS_F32))
    return jnp.concatenate([first, x[:, 1:]], axis=1)


def expmap0(u, c):
    """Hyperboloid.expmap0 (plain JAX; used only to build example inputs)."""
    K = 1.0 / c
    sqrtK = K ** 0.5
    x = u[:, 1:]
    x_norm = jnp.linalg.norm(x, axis=1, keepdims=True)
    x_norm = jnp.maximum(x_norm, MIN_NORM)
    theta = x_norm / sqrtK
    first = sqrtK * jnp.cosh(theta)
    rest = sqrtK * jnp.sinh(theta) * x / x_norm
    res = jnp.concatenate([first, rest], axis=1)
    return proj_ref(res, c)


def _check(got, inp, c):
    ref = proj_ref(inp, c)
    assert got.shape == inp.shape and got.dtype == jnp.float32
    assert jnp.allclose(got, ref, atol=1e-6, rtol=1e-6)


if __name__ == "__main__":
    c = 1.0
    key = jax.random.PRNGKey(0)

    # ---- small, module-like case (single-tile path) ----
    num_users, num_items, hidden_dim = 16, 16, 32
    batch = 8
    ku, ki = jax.random.split(key)
    user_eu = jax.random.uniform(ku, (num_users, hidden_dim), jnp.float32, -0.1, 0.1)
    item_eu = jax.random.uniform(ki, (num_items, hidden_dim), jnp.float32, -0.1, 0.1)
    user_hb = expmap0(user_eu, c)            # __init__: uniform_ then expmap0
    item_hb = expmap0(item_eu, c)

    user_emb = user_hb[:batch]
    pos_emb = item_hb[:batch]
    neg_emb = item_hb[num_items - batch:]

    user_hyp, pos_hyp, neg_hyp = jax.block_until_ready(
        model_forward(user_emb, pos_emb, neg_emb, c)
    )
    for got, inp in ((user_hyp, user_emb), (pos_hyp, pos_emb), (neg_hyp, neg_emb)):
        _check(got, inp, c)

    # ---- larger case to exercise the pipelined row grid (grid > 1) ----
    B2, D2 = 1024, 32
    k2a, k2b, k2c = jax.random.split(jax.random.PRNGKey(1), 3)
    u2 = expmap0(jax.random.uniform(k2a, (B2, D2), jnp.float32, -0.1, 0.1), c)
    p2 = expmap0(jax.random.uniform(k2b, (B2, D2), jnp.float32, -0.1, 0.1), c)
    n2 = expmap0(jax.random.uniform(k2c, (B2, D2), jnp.float32, -0.1, 0.1), c)
    out2 = jax.block_until_ready(model_forward(u2, p2, n2, c, tb=512))
    for got, inp in zip(out2, (u2, p2, n2)):
        _check(got, inp, c)

    # TODO(synk): optionally alias inputs->outputs (input_output_aliases) and
    # emit only column 0 when callers can donate the inputs; skipped here to
    # keep the reference inputs alive for the correctness check.
    print("KERNEL_OK")
</pallas_src>

<mosaic_0001>
module attributes {stable_mosaic.version = 11 : i64} {
  func.func @proj_kernel(%arg0: i32, %arg1: memref<1xf32, #tpu.memory_space<smem>>, %arg2: memref<8x32xf32, #tpu.memory_space<vmem>>, %arg3: memref<8x32xf32, #tpu.memory_space<vmem>>, %arg4: memref<8x32xf32, #tpu.memory_space<vmem>>, %arg5: memref<8x32xf32, #tpu.memory_space<vmem>>, %arg6: memref<8x32xf32, #tpu.memory_space<vmem>>, %arg7: memref<8x32xf32, #tpu.memory_space<vmem>>) attributes {dimension_semantics = [#tpu.dimension_semantics<parallel>], iteration_bounds = array<i64: 1>, scalar_prefetch = 0 : i64, scratch_operands = 0 : i64, tpu.core_type = #tpu.core_type<tc>, window_params = [{transform_indices = @transform_0, window_bounds = array<i64: 1>}, {transform_indices = @transform_1, window_bounds = array<i64: 8, 32>}, {transform_indices = @transform_2, window_bounds = array<i64: 8, 32>}, {transform_indices = @transform_3, window_bounds = array<i64: 8, 32>}, {transform_indices = @transform_4, window_bounds = array<i64: 8, 32>}, {transform_indices = @transform_5, window_bounds = array<i64: 8, 32>}, {transform_indices = @transform_6, window_bounds = array<i64: 8, 32>}]} {
    %c0 = arith.constant 0 : index
    %0 = memref.load %arg1[%c0] : memref<1xf32, #tpu.memory_space<smem>>
    %1 = tpu.iota {dimensions = array<i32: 1>} : vector<8x32xi32>
    %c0_i32 = arith.constant 0 : i32
    %2 = vector.broadcast %c0_i32 : i32 to vector<8x32xi32>
    %3 = arith.cmpi eq, %1, %2 : vector<8x32xi32>
    %c0_0 = arith.constant 0 : index
    %c0_1 = arith.constant 0 : index
    %4 = vector.load %arg2[%c0_0, %c0_1] : memref<8x32xf32, #tpu.memory_space<vmem>>, vector<8x32xf32>
    %5 = arith.mulf %4, %4 : vector<8x32xf32>
    %cst = arith.constant 0.000000e+00 : f32
    %6 = vector.broadcast %cst : f32 to vector<8x32xf32>
    %7 = arith.select %3, %6, %5 : vector<8x32xi1>, vector<8x32xf32>
    %cst_2 = arith.constant dense<0.000000e+00> : vector<8xf32>
    %8 = vector.multi_reduction <add>, %7, %cst_2 [1] : vector<8x32xf32> to vector<8xf32>
    %9 = vector.shape_cast %8 : vector<8xf32> to vector<8x1xf32>
    %10 = vector.broadcast %0 : f32 to vector<8x1xf32>
    %11 = arith.addf %10, %9 : vector<8x1xf32>
    %cst_3 = arith.constant 1.000000e-07 : f32
    %12 = vector.broadcast %cst_3 : f32 to vector<8x1xf32>
    %13 = arith.maximumf %11, %12 : vector<8x1xf32>
    %14 = math.sqrt %13 : vector<8x1xf32>
    %15 = vector.shape_cast %14 : vector<8x1xf32> to vector<8x1xf32>
    %16 = vector.broadcast %15 : vector<8x1xf32> to vector<8x32xf32>
    %17 = arith.select %3, %16, %4 : vector<8x32xi1>, vector<8x32xf32>
    %c0_4 = arith.constant 0 : index
    %c0_5 = arith.constant 0 : index
    %18 = vector.load %arg5[%c0_4, %c0_5] : memref<8x32xf32, #tpu.memory_space<vmem>>, vector<8x32xf32>
    tpu.vector_store %arg5[%c0_4, %c0_5], %17 {strides = array<i32>} : memref<8x32xf32, #tpu.memory_space<vmem>>, vector<8x32xf32>,
    %c0_6 = arith.constant 0 : index
    %c0_7 = arith.constant 0 : index
    %19 = vector.load %arg3[%c0_6, %c0_7] : memref<8x32xf32, #tpu.memory_space<vmem>>, vector<8x32xf32>
    %20 = arith.mulf %19, %19 : vector<8x32xf32>
    %cst_8 = arith.constant 0.000000e+00 : f32
    %21 = vector.broadcast %cst_8 : f32 to vector<8x32xf32>
    %22 = arith.select %3, %21, %20 : vector<8x32xi1>, vector<8x32xf32>
    %cst_9 = arith.constant dense<0.000000e+00> : vector<8xf32>
    %23 = vector.multi_reduction <add>, %22, %cst_9 [1] : vector<8x32xf32> to vector<8xf32>
    %24 = vector.shape_cast %23 : vector<8xf32> to vector<8x1xf32>
    %25 = vector.broadcast %0 : f32 to vector<8x1xf32>
    %26 = arith.addf %25, %24 : vector<8x1xf32>
    %cst_10 = arith.constant 1.000000e-07 : f32
    %27 = vector.broadcast %cst_10 : f32 to vector<8x1xf32>
    %28 = arith.maximumf %26, %27 : vector<8x1xf32>
    %29 = math.sqrt %28 : vector<8x1xf32>
    %30 = vector.shape_cast %29 : vector<8x1xf32> to vector<8x1xf32>
    %31 = vector.broadcast %30 : vector<8x1xf32> to vector<8x32xf32>
    %32 = arith.select %3, %31, %19 : vector<8x32xi1>, vector<8x32xf32>
    %c0_11 = arith.constant 0 : index
    %c0_12 = arith.constant 0 : index
    %33 = vector.load %arg6[%c0_11, %c0_12] : memref<8x32xf32, #tpu.memory_space<vmem>>, vector<8x32xf32>
    tpu.vector_store %arg6[%c0_11, %c0_12], %32 {strides = array<i32>} : memref<8x32xf32, #tpu.memory_space<vmem>>, vector<8x32xf32>,
    %c0_13 = arith.constant 0 : index
    %c0_14 = arith.constant 0 : index
    %34 = vector.load %arg4[%c0_13, %c0_14] : memref<8x32xf32, #tpu.memory_space<vmem>>, vector<8x32xf32>
    %35 = arith.mulf %34, %34 : vector<8x32xf32>
    %cst_15 = arith.constant 0.000000e+00 : f32
    %36 = vector.broadcast %cst_15 : f32 to vector<8x32xf32>
    %37 = arith.select %3, %36, %35 : vector<8x32xi1>, vector<8x32xf32>
    %cst_16 = arith.constant dense<0.000000e+00> : vector<8xf32>
    %38 = vector.multi_reduction <add>, %37, %cst_16 [1] : vector<8x32xf32> to vector<8xf32>
    %39 = vector.shape_cast %38 : vector<8xf32> to vector<8x1xf32>
    %40 = vector.broadcast %0 : f32 to vector<8x1xf32>
    %41 = arith.addf %40, %39 : vector<8x1xf32>
    %cst_17 = arith.constant 1.000000e-07 : f32
    %42 = vector.broadcast %cst_17 : f32 to vector<8x1xf32>
    %43 = arith.maximumf %41, %42 : vector<8x1xf32>
    %44 = math.sqrt %43 : vector<8x1xf32>
    %45 = vector.shape_cast %44 : vector<8x1xf32> to vector<8x1xf32>
    %46 = vector.broadcast %45 : vector<8x1xf32> to vector<8x32xf32>
    %47 = arith.select %3, %46, %34 : vector<8x32xi1>, vector<8x32xf32>
    %c0_18 = arith.constant 0 : index
    %c0_19 = arith.constant 0 : index
    %48 = vector.load %arg7[%c0_18, %c0_19] : memref<8x32xf32, #tpu.memory_space<vmem>>, vector<8x32xf32>
    tpu.vector_store %arg7[%c0_18, %c0_19], %47 {strides = array<i32>} : memref<8x32xf32, #tpu.memory_space<vmem>>, vector<8x32xf32>,
    return
  }
  func.func @transform_0(%arg0: i32) -> i32 {
    %c0_i32 = arith.constant 0 : i32
    %c0_i32_0 = arith.constant 0 : i32
    return %c0_i32 : i32
  }
  func.func @transform_1(%arg0: i32) -> (i32, i32) {
    %c0_i32 = arith.constant 0 : i32
    %c0_i32_0 = arith.constant 0 : i32
    return %arg0, %c0_i32 : i32, i32
  }
  func.func @transform_2(%arg0: i32) -> (i32, i32) {
    %c0_i32 = arith.constant 0 : i32
    %c0_i32_0 = arith.constant 0 : i32
    return %arg0, %c0_i32 : i32, i32
  }
  func.func @transform_3(%arg0: i32) -> (i32, i32) {
    %c0_i32 = arith.constant 0 : i32
    %c0_i32_0 = arith.constant 0 : i32
    return %arg0, %c0_i32 : i32, i32
  }
  func.func @transform_4(%arg0: i32) -> (i32, i32) {
    %c0_i32 = arith.constant 0 : i32
    %c0_i32_0 = arith.constant 0 : i32
    return %arg0, %c0_i32 : i32, i32
  }
  func.func @transform_5(%arg0: i32) -> (i32, i32) {
    %c0_i32 = arith.constant 0 : i32
    %c0_i32_0 = arith.constant 0 : i32
    return %arg0, %c0_i32 : i32, i32
  }
  func.func @transform_6(%arg0: i32) -> (i32, i32) {
    %c0_i32 = arith.constant 0 : i32
    %c0_i32_0 = arith.constant 0 : i32
    return %arg0, %c0_i32 : i32, i32
  }
}

</mosaic_0001>

<bundles_post_ra>
// kernel: tpu_custom_call.1
= control target key start
LH: loop header
LB: loop body
LE: loop exit
PB: predicated region body
PF: predicated region fallthrough
CT: control target
= control target key end

     0   :  { %13 = vsyncpa [#allocation4], 0  ;;  %s422_s0 = inlined_call_operand.<no memory space> [shape: f32[1], index: 0, kind: input, shape index: {}]   ;;  %s423_s1 = inlined_call_operand.hbm [shape: f32[8,32], index: 1, kind: input, shape index: {}]   ;;  %s424_s2 = inlined_call_operand.hbm [shape: f32[8,32], index: 2, kind: input, shape index: {}]   ;;  %s425_s3 = inlined_call_operand.vmem [shape: f32[8,32], index: 3, kind: input, shape index: {}]   ;;  %s426_s4 = inlined_call_operand.hbm [shape: f32[8,32], index: 4, kind: output, shape index: {0}]   ;;  %s427_s5 = inlined_call_operand.hbm [shape: f32[8,32], index: 5, kind: output, shape index: {1}]   ;;  %s428_s6 = inlined_call_operand.hbm [shape: f32[8,32], index: 6, kind: output, shape index: {2}]  }
   0x1   :  { %14 = vsyncpa [#allocation7], 0 }
   0x2   :  { %15 = vsyncpa [#allocation5], 0 }
   0x3   :  { %16 = vsyncpa [#allocation10], 0  ;;  %s276_s21 = smov [#allocation3]   ;;  %s277_s23 = smov [#allocation6]  }
   0x4   :  { %s25_s22 = sshll.u32 %s276_s21, 4  ;;  %s35_s24 = sshll.u32 %s277_s23, 4  ;;  %s26_s22 = int_to_ptr.vmem [resolvable:$true] %s25_s22  ;;  %s36_s24 = int_to_ptr.vmem [resolvable:$true] %s35_s24 }
   0x5   :  { %s158_s27 = scalar_lea.hbm %s423_s1, 128 }
   0x6   :  { %p159_p0 = scmp.ne.s32.totalorder %s423_s1, %s158_s27  ;;  %p162_p1 = scmp.lt.u32.totalorder %s158_s27, %s423_s1 }
   0x8   :  { %p164_p2 = pnand %p162_p1, %p159_p0 }
   0xa   :  { %167 = shalt.err (!%p164_p2)
}
   0xb   :  { %s168_s8 = scalar_lea.vmem %s26_s22, 128  ;;  %p173_p4 = scmp.lt.s32.totalorder %s26_s22, %s26_s22 }
   0xc   :  { %p169_p3 = scmp.ne.s32.totalorder %s26_s22, %s168_s8  ;;  %p174_p5 = scmp.lt.s32.totalorder %s168_s8, %s168_s8 }
   0xe   :  { %p175_p6 = por %p174_p5, %p173_p4 }
  0x10   :  { %p176_p7 = pnand %p175_p6, %p169_p3 }
  0x12   :  { %179 = shalt.err (!%p176_p7)
}
  0x13   :  { %28 = dma.hbm_to_vmem [thread:$0]  %s423_s1, 128, %s26_s22, [#allocation4]  }
  0x14   :  { %s180_s13 = scalar_lea.hbm %s424_s2, 128 }
  0x15   :  { %p181_p8 = scmp.ne.s32.totalorder %s424_s2, %s180_s13  ;;  %p184_p9 = scmp.lt.u32.totalorder %s180_s13, %s424_s2 }
  0x17   :  { %p186_p10 = pnand %p184_p9, %p181_p8 }
  0x19   :  { %189 = shalt.err (!%p186_p10)
}
  0x1a   :  { %s190_s18 = scalar_lea.vmem %s36_s24, 128  ;;  %p195_p12 = scmp.lt.s32.totalorder %s36_s24, %s36_s24 }
  0x1b   :  { %p191_p11 = scmp.ne.s32.totalorder %s36_s24, %s190_s18  ;;  %p196_p13 = scmp.lt.s32.totalorder %s190_s18, %s190_s18 }
  0x1d   :  { %p197_p0 = por %p196_p13, %p195_p12 }
  0x1f   :  { %p198_p1 = pnand %p197_p0, %p191_p11 }
  0x21   :  { %201 = shalt.err (!%p198_p1)
}
  0x22   :  { %38 = dma.hbm_to_vmem [thread:$0]  %s424_s2, 128, %s36_s24, [#allocation7]  }
  0x23   :  { %268 = dma.done.wait [#allocation4], 128  }
  0x24   :  { %269 = vsyncadd [#allocation4], 4294967168 }
  0x25   :  { %270 = dma.done.wait [#allocation7], 128  }
  0x26   :  { %271 = vsyncadd [#allocation7], 4294967168  ;;  %v48_v0 = vlaneseq  ;;  %v87_v2 = vld [vmem:[%s425_s3] sm:$0xff]  ;;  %v70_v3 = vld [vmem:[#allocation6] sm:$0xff]  ;;  %vm54_vm1 = vcmask 261120   ;;  %v58_v14 = vstv %s422_s0  ;;  %s278_s22 = smov [#allocation9]  }
  0x27   :  { %v346_v4 = vld [vmem:[#allocation3] sm:$0xff]  ;;  %v88_v5 = vmul.f32 %v87_v2, %v87_v2  ;;  %v71_v6 = vmul.f32 %v70_v3, %v70_v3  ;;  %s120_s23 = sshll.u32 %s278_s22, 4  ;;  %s279_s0 = smov [#allocation11]   ;;  %s121_s23 = int_to_ptr.vmem [resolvable:$true] %s120_s23 }
  0x28   :  { %v340_v1 = vand.u32 127, %v48_v0  ;;  %v52_v7 = vmul.f32 %v346_v4, %v346_v4  ;;  %s130_s24 = sshll.u32 %s279_s0, 4  ;;  %s280_s25 = smov [#allocation8]   ;;  %s367_s24 = int_to_ptr.vmem [resolvable:$true] %s130_s24 }
  0x29   :  { %s110_s26 = sshll.u32 %s280_s25, 4  ;;  %s202_s27 = scalar_lea.vmem %s121_s23, 128  ;;  %s370_s26 = int_to_ptr.vmem [resolvable:$true] %s110_s26 }
  0x2a   :  { %vm50_vm0 = vcmp.eq.s32.totalorder %v340_v1, 0  ;;  %p203_p2 = scmp.ne.s32.totalorder %s121_s23, %s202_s27  ;;  %p207_p3 = scmp.lt.s32.totalorder %s121_s23, %s121_s23 }
  0x2b   :  { %v89_v8 = vsel %vm50_vm0, 0.0, %v88_v5  ;;  %v72_v9 = vsel %vm50_vm0, 0.0, %v71_v6  ;;  %v53_v10 = vsel %vm50_vm0, 0.0, %v52_v7  ;;  %p208_p4 = scmp.lt.s32.totalorder %s202_s27, %s202_s27 }
  0x2c   :  { %v90_v11 = vsel %vm54_vm1, %v89_v8, 0.0  ;;  %v73_v12 = vsel %vm54_vm1, %v72_v9, 0.0  ;;  %v55_v13 = vsel %vm54_vm1, %v53_v10, 0.0 }
  0x2d   :  { %91 = vadd.xlane.f32.xlu1 %v90_v11  ;;  %74 = vadd.xlane.f32.xlu0 %v73_v12  ;;  %p209_p5 = por %p208_p4, %p207_p3 }
  0x2f   :  { %p210_p6 = pnand %p209_p5, %p203_p2 }
  0x31   :  { %56 = vadd.xlane.f32.xlu0 %v55_v13 }
  0xba   :  { %v92_v15 = vpop.xlane.xlu1 %91  ;;  %v75_v16 = vpop.xlane.xlu0 %74 }
  0xbb   :  { %v93_v17 = vadd.f32 %v92_v15, %v58_v14  ;;  %v76_v18 = vadd.f32 %v75_v16, %v58_v14 }
  0xbd   :  { %v94_v19 = vmax.f32 %v93_v17, 1e-07  ;;  %v77_v20 = vmax.f32 %v76_v18, 1e-07 }
  0xbe   :  { %v57_v21 = vpop.xlane.xlu0 %56 }
  0xbf   :  { %152 = vrsqrt.f32 %v94_v19  ;;  %v59_v22 = vadd.f32 %v58_v14, %v57_v21  ;;  %vm97_vm2 = vcmp.eq.f32.partialorder %v94_v19, inf  ;;  %v100_v28 = vand.u32 2147483648, %v94_v19 }
  0xc0   :  { %154 = vrsqrt.f32 %v77_v20  ;;  %vm80_vm3 = vcmp.eq.f32.partialorder %v77_v20, inf  ;;  %v83_v29 = vand.u32 2147483648, %v77_v20  ;;  %vm99_vm4 = vcmp.eq.f32.partialorder %v94_v19, 0.0 }
  0xc1   :  { %v60_v23 = vmax.f32 %v59_v22, 1e-07  ;;  %vm82_vm5 = vcmp.eq.f32.partialorder %v77_v20, 0.0 }
  0xc3   :  { %156 = vrsqrt.f32 %v60_v23  ;;  %vm63_vm6 = vcmp.eq.f32.partialorder %v60_v23, inf  ;;  %v66_v38 = vand.u32 2147483648, %v60_v23  ;;  %vm65_vm7 = vcmp.eq.f32.partialorder %v60_v23, 0.0 }
  0xc9   :  { %v153_v24 = vpop.eup %152 }
  0xca   :  { %v155_v25 = vpop.eup %154  ;;  %v96_v26 = vmul.f32 %v153_v24, %v94_v19 }
  0xcb   :  { %v79_v27 = vmul.f32 %v155_v25, %v77_v20 }
  0xcc   :  { %v98_v30 = vsel %vm97_vm2, %v94_v19, %v96_v26 }
  0xcd   :  { %v157_v31 = vpop.eup %156  ;;  %v81_v32 = vsel %vm80_vm3, %v77_v20, %v79_v27  ;;  %v101_v33 = vsel %vm99_vm4, %v100_v28, %v98_v30 }
  0xce   :  { %v84_v34 = vsel %vm82_vm5, %v83_v29, %v81_v32  ;;  %v62_v35 = vmul.f32 %v157_v31, %v60_v23  ;;  %v102_v36 = vsel %vm50_vm0, %v101_v33, %v87_v2 }
  0xcf   :  { %v85_v37 = vsel %vm50_vm0, %v84_v34, %v70_v3  ;;  %103 = vst.msk [vmem:[#allocation11] sm:$0xff] %vm54_vm1, %v102_v36 }
  0xd0   :  { %86 = vst.msk [vmem:[#allocation9] sm:$0xff] %vm54_vm1, %v85_v37  ;;  %v64_v39 = vsel %vm63_vm6, %v60_v23, %v62_v35 }
  0xd1   :  { %213 = shalt.err (!%p210_p6)
}
  0xd2   :  { %s214_s30 = scalar_lea.hbm %s427_s5, 128 }
  0xd3   :  { %p215_p7 = scmp.ne.s32.totalorder %s427_s5, %s214_s30  ;;  %p218_p8 = scmp.lt.u32.totalorder %s214_s30, %s427_s5 }
  0xd5   :  { %p220_p9 = pnand %p218_p8, %p215_p7 }
  0xd7   :  { %223 = shalt.err (!%p220_p9)
}
  0xd8   :  { %123 = dma.vmem_to_hbm [thread:$0]  %s121_s23, 128, %s427_s5, [#allocation10]   ;;  %v67_v40 = vsel %vm65_vm7, %v66_v38, %v64_v39 }
  0xd9   :  { %v68_v41 = vsel %vm50_vm0, %v67_v40, %v346_v4  ;;  %s224_s13 = scalar_lea.vmem %s367_s24, 128  ;;  %p229_p11 = scmp.lt.s32.totalorder %s367_s24, %s367_s24 }
  0xda   :  { %p225_p10 = scmp.ne.s32.totalorder %s367_s24, %s224_s13  ;;  %p230_p12 = scmp.lt.s32.totalorder %s224_s13, %s224_s13 }
  0xdc   :  { %p231_p13 = por %p230_p12, %p229_p11 }
  0xde   :  { %p232_p0 = pnand %p231_p13, %p225_p10 }
  0xe0   :  { %235 = shalt.err (!%p232_p0)
}
  0xe1   :  { %s236_s16 = scalar_lea.hbm %s428_s6, 128 }
  0xe2   :  { %p237_p1 = scmp.ne.s32.totalorder %s428_s6, %s236_s16  ;;  %p240_p2 = scmp.lt.u32.totalorder %s236_s16, %s428_s6 }
  0xe4   :  { %p242_p3 = pnand %p240_p2, %p237_p1 }
  0xe6   :  { %245 = shalt.err (!%p242_p3)
}
  0xe7   :  { %133 = dma.vmem_to_hbm [thread:$0]  %s367_s24, 128, %s428_s6, [#allocation10]   ;;  %69 = vst.msk [vmem:[#allocation8] sm:$0xff] %vm54_vm1, %v68_v41 }
  0xe8   :  { %s246_s21 = scalar_lea.vmem %s370_s26, 128  ;;  %p251_p5 = scmp.lt.s32.totalorder %s370_s26, %s370_s26 }
  0xe9   :  { %p247_p4 = scmp.ne.s32.totalorder %s370_s26, %s246_s21  ;;  %p252_p6 = scmp.lt.s32.totalorder %s246_s21, %s246_s21 }
  0xeb   :  { %p253_p7 = por %p252_p6, %p251_p5 }
  0xed   :  { %p254_p8 = pnand %p253_p7, %p247_p4 }
  0xef   :  { %257 = shalt.err (!%p254_p8)
}
  0xf0   :  { %s258_s22 = scalar_lea.hbm %s426_s4, 128 }
  0xf1   :  { %p259_p9 = scmp.ne.s32.totalorder %s426_s4, %s258_s22  ;;  %p262_p10 = scmp.lt.u32.totalorder %s258_s22, %s426_s4 }
  0xf3   :  { %p264_p11 = pnand %p262_p10, %p259_p9 }
  0xf5   :  { %267 = shalt.err (!%p264_p11)
}
  0xf6   :  { %113 = dma.vmem_to_hbm [thread:$0]  %s370_s26, 128, %s426_s4, [#allocation5]  }
  0xf7   :  { %272 = dma.done.wait [#allocation5], 128  }
  0xf8   :  { %273 = vsyncadd [#allocation5], 4294967168 }
  0xf9   :  { %274 = dma.done.wait [#allocation10], 256  }
  0xfa   :  { %275 = vsyncadd [#allocation10], 4294967040 }
  0xfb   :  { %143 = vsyncpa [#allocation4], 1 }
  0xfc   :  { %144 = vsyncpa [#allocation7], 1 }
  0xfd   :  { %145 = vsyncpa [#allocation5], 1 }
  0xfe   :  { %146 = vsyncpa [#allocation10], 1 }

</bundles_post_ra>
